<compile_context>
chip_gen: v5e
topology: v5e:2x2
jax: 0.10.0
libtpu: 0.0.40
codegen_flags: <defaults>
</compile_context>

<pallas_src>
import jax
import jax.numpy as jnp
from jax.experimental import pallas as pl
from jax.experimental.pallas import tpu as pltpu


# ----------------------------- module hyper-params -----------------------------
PARTICLE_SIZE = 2
N_HIDDEN = 1            # kernel below is written for n_hidden == 1
N_FEATURES = 64
RAND_FEATURES = 64
EST_BOUNDS = 1.0


def _round_up(x, m):
    return ((x + m - 1) // m) * m


def _num_parallel_tensorcores():
    """2 on v7x (its two TensorCores can shard 'parallel' grid axes), else 1."""
    try:
        dev = jax.devices()[0]
        if dev.platform != "tpu":
            return 1
        kind = str(getattr(dev, "device_kind", "")).lower()
        return 2 if ("v7" in kind or "7x" in kind) else 1
    except Exception:
        return 1


# --------------------------------- Pallas kernel -------------------------------
def _sampler_kernel(x_ref, w0_ref, b0_ref, w1_ref, b1_ref, w2t_ref, b2_ref, o_ref):
    # Hidden layers on the MXU (f32 accumulate), bias+ReLU on the VPU.
    h = jnp.dot(x_ref[...], w0_ref[...], preferred_element_type=jnp.float32)
    h = jnp.maximum(h + b0_ref[...], 0.0)
    h = jnp.dot(h, w1_ref[...], preferred_element_type=jnp.float32)
    h = jnp.maximum(h + b1_ref[...], 0.0)

    # Final Linear(n_features -> particle_size): particle_size is tiny (2), so
    # compute it as per-column VPU multiplies + XLU lane-reductions (otherwise
    # idle slots) instead of a 98%-padded MXU matmul.  est_bounds/2 is already
    # folded into w2t/b2.
    ps = w2t_ref.shape[0]
    cols = [jnp.sum(h * w2t_ref[p:p + 1, :], axis=-1, keepdims=True)
            for p in range(ps)]
    out = jnp.concatenate(cols, axis=-1) + b2_ref[...]
    o_ref[...] = out.astype(o_ref.dtype)       # compact (tile, particle_size) store


# ----------------------------------- wrapper ------------------------------------
def _prep_params(params, est_bounds):
    """Fold est_bounds/2 into the output layer; transpose W2 to (ps, nf)."""
    w0, b0, w1, b1, w2, b2 = params
    scale = jnp.float32(est_bounds / 2.0)
    w2t = (w2 * scale).T                       # (particle_size, n_features)
    b2s = (b2 * scale).reshape(1, -1)          # (1, particle_size)
    return (w0, b0.reshape(1, -1), w1, b1.reshape(1, -1), w2t, b2s)


def pairwise_sampler_forward(num_samples, key, params, *, est_bounds=EST_BOUNDS,
                             tile_n=2048, rand=None):
    """Draw `num_samples` particles. Returns [num_samples, particle_size] float32.
    `rand` may be supplied explicitly (shape [num_samples, rand_features]) for
    deterministic testing; otherwise it is drawn with jax.random.normal(key)."""
    w0, b0, w1, b1, w2t, b2 = _prep_params(params, est_bounds)
    rf, nf = w0.shape
    ps = w2t.shape[0]

    n = int(num_samples)
    if rand is None:
        rand = jax.random.normal(key, (n, rf), dtype=jnp.float32)
    rand = rand.astype(jnp.float32)

    # Tile selection: biggest tile up to tile_n; only split 2-way (for megacore)
    # on v7x -- on v5e/v6e that split is pure per-step overhead.
    ncores = _num_parallel_tensorcores()
    tile = max(128, min(int(tile_n), _round_up(pl.cdiv(n, ncores), 128)))
    n_pad = _round_up(n, tile)
    grid = (n_pad // tile,)

    rand_p = rand if n_pad == n else jnp.pad(rand, ((0, n_pad - n), (0, 0)))

    row = lambda i: (i, 0)        # sample-tiled blocks
    const = lambda i: (0, 0)      # grid-invariant weight/bias blocks

    cost = pl.CostEstimate(
        flops=2 * n_pad * (rf * nf + nf * nf + nf * ps),
        transcendentals=0,
        bytes_accessed=4 * (n_pad * rf + n_pad * ps
                            + w0.size + b0.size + w1.size + b1.size
                            + w2t.size + b2.size),
    )

    out = pl.pallas_call(
        _sampler_kernel,
        out_shape=jax.ShapeDtypeStruct((n_pad, ps), jnp.float32),
        grid_spec=pltpu.PrefetchScalarGridSpec(
            num_scalar_prefetch=0,
            grid=grid,
            in_specs=[
                pl.BlockSpec((tile, rf), row),     # rand
                pl.BlockSpec((rf, nf), const),     # W0 (in, out)
                pl.BlockSpec((1, nf), const),      # b0
                pl.BlockSpec((nf, nf), const),     # W1
                pl.BlockSpec((1, nf), const),      # b1
                pl.BlockSpec((ps, nf), const),     # W2^T (scaled)
                pl.BlockSpec((1, ps), const),      # b2   (scaled)
            ],
            out_specs=pl.BlockSpec((tile, ps), row),
        ),
        compiler_params=pltpu.CompilerParams(
            dimension_semantics=("parallel",)),
        cost_estimate=cost,
    )(rand_p, w0, b0, w1, b1, w2t, b2)

    return out[:n]


# -------------------------- deterministic parameter init -----------------------
def _linear_init(key, fan_in, fan_out):
    """torch.nn.Linear default init: U(-1/sqrt(fan_in), 1/sqrt(fan_in)).
    Weight returned pre-transposed as [fan_in, fan_out]."""
    kw, kb = jax.random.split(key)
    bound = 1.0 / jnp.sqrt(jnp.float32(fan_in))
    w = jax.random.uniform(kw, (fan_in, fan_out), jnp.float32, -bound, bound)
    b = jax.random.uniform(kb, (1, fan_out), jnp.float32, -bound, bound)
    return w, b


def init_params(key):
    k0, k1, k2 = jax.random.split(key, 3)
    w0, b0 = _linear_init(k0, RAND_FEATURES, N_FEATURES)
    w1, b1 = _linear_init(k1, N_FEATURES, N_FEATURES)
    w2, b2 = _linear_init(k2, N_FEATURES, PARTICLE_SIZE)
    return (w0, b0, w1, b1, w2, b2)


# pure-JAX reference (same rand -> must match the kernel exactly)
def _ref_forward(rand, params, est_bounds=EST_BOUNDS):
    w0, b0, w1, b1, w2, b2 = params
    h = jnp.maximum(rand @ w0 + b0, 0.0)
    h = jnp.maximum(h @ w1 + b1, 0.0)
    return (h @ w2 + b2) * est_bounds / 2.0


if __name__ == "__main__":
    key = jax.random.PRNGKey(0)
    params = init_params(key)

    # 1) explicit rand -> exact check of the MLP math vs the pure-JAX reference
    num_samples = 256
    rand = jax.random.normal(jax.random.PRNGKey(1),
                             (num_samples, RAND_FEATURES), jnp.float32)
    samples = jax.block_until_ready(
        pairwise_sampler_forward(num_samples, None, params, rand=rand))
    assert samples.shape == (num_samples, PARTICLE_SIZE)
    assert bool(jnp.all(jnp.isfinite(samples)))
    ref = _ref_forward(rand, params)
    assert jnp.allclose(samples, ref, atol=1e-5, rtol=1e-5), "MLP mismatch vs reference"

    # 2) ragged sample count via the default key-based draw (exercises padding)
    n2 = 300
    s2 = jax.block_until_ready(
        pairwise_sampler_forward(n2, jax.random.PRNGKey(2), params))
    assert s2.shape == (n2, PARTICLE_SIZE)
    assert bool(jnp.all(jnp.isfinite(s2)))
    r2 = jax.random.normal(jax.random.PRNGKey(2), (n2, RAND_FEATURES), jnp.float32)
    assert jnp.allclose(s2, _ref_forward(r2, params), atol=1e-5, rtol=1e-5)

    print("KERNEL_OK")
</pallas_src>

<mosaic_0001>
module attributes {stable_mosaic.version = 11 : i64} {
  func.func @_sampler_kernel(%arg0: i32, %arg1: memref<256x64xf32, #tpu.memory_space<vmem>>, %arg2: memref<64x64xf32, #tpu.memory_space<vmem>>, %arg3: memref<1x64xf32, #tpu.memory_space<vmem>>, %arg4: memref<64x64xf32, #tpu.memory_space<vmem>>, %arg5: memref<1x64xf32, #tpu.memory_space<vmem>>, %arg6: memref<2x64xf32, #tpu.memory_space<vmem>>, %arg7: memref<1x2xf32, #tpu.memory_space<vmem>>, %arg8: memref<256x2xf32, #tpu.memory_space<vmem>>) attributes {dimension_semantics = [#tpu.dimension_semantics<parallel>], iteration_bounds = array<i64: 1>, scalar_prefetch = 0 : i64, scratch_operands = 0 : i64, tpu.core_type = #tpu.core_type<tc>, window_params = [{transform_indices = @transform_0, window_bounds = array<i64: 256, 64>}, {pipeline_mode = #tpu.pipeline_mode<synchronous>, transform_indices = @transform_1, window_bounds = array<i64: 64, 64>}, {pipeline_mode = #tpu.pipeline_mode<synchronous>, transform_indices = @transform_2, window_bounds = array<i64: 1, 64>}, {pipeline_mode = #tpu.pipeline_mode<synchronous>, transform_indices = @transform_3, window_bounds = array<i64: 64, 64>}, {pipeline_mode = #tpu.pipeline_mode<synchronous>, transform_indices = @transform_4, window_bounds = array<i64: 1, 64>}, {pipeline_mode = #tpu.pipeline_mode<synchronous>, transform_indices = @transform_5, window_bounds = array<i64: 2, 64>}, {pipeline_mode = #tpu.pipeline_mode<synchronous>, transform_indices = @transform_6, window_bounds = array<i64: 1, 2>}, {transform_indices = @transform_7, window_bounds = array<i64: 256, 2>}]} {
    %c0 = arith.constant 0 : index
    %c0_0 = arith.constant 0 : index
    %0 = vector.load %arg1[%c0, %c0_0] : memref<256x64xf32, #tpu.memory_space<vmem>>, vector<256x64xf32>
    %c0_1 = arith.constant 0 : index
    %c0_2 = arith.constant 0 : index
    %1 = vector.load %arg2[%c0_1, %c0_2] : memref<64x64xf32, #tpu.memory_space<vmem>>, vector<64x64xf32>
    %cst = arith.constant dense<0.000000e+00> : vector<256x64xf32>
    %2 = tpu.matmul %0, %1, %cst {dimension_numbers = #tpu.dot_dimension_numbers<[1], [0], [0], [1], [0, 0, 1, 1], [], []>} : vector<256x64xf32>, vector<64x64xf32>, vector<256x64xf32> -> vector<256x64xf32>
    %c0_3 = arith.constant 0 : index
    %c0_4 = arith.constant 0 : index
    %3 = vector.load %arg3[%c0_3, %c0_4] : memref<1x64xf32, #tpu.memory_space<vmem>>, vector<1x64xf32>
    %4 = vector.broadcast %3 : vector<1x64xf32> to vector<256x64xf32>
    %5 = arith.addf %2, %4 : vector<256x64xf32>
    %cst_5 = arith.constant 0.000000e+00 : f32
    %6 = vector.broadcast %cst_5 : f32 to vector<256x64xf32>
    %7 = arith.maximumf %5, %6 : vector<256x64xf32>
    %c0_6 = arith.constant 0 : index
    %c0_7 = arith.constant 0 : index
    %8 = vector.load %arg4[%c0_6, %c0_7] : memref<64x64xf32, #tpu.memory_space<vmem>>, vector<64x64xf32>
    %cst_8 = arith.constant dense<0.000000e+00> : vector<256x64xf32>
    %9 = tpu.matmul %7, %8, %cst_8 {dimension_numbers = #tpu.dot_dimension_numbers<[1], [0], [0], [1], [0, 0, 1, 1], [], []>} : vector<256x64xf32>, vector<64x64xf32>, vector<256x64xf32> -> vector<256x64xf32>
    %c0_9 = arith.constant 0 : index
    %c0_10 = arith.constant 0 : index
    %10 = vector.load %arg5[%c0_9, %c0_10] : memref<1x64xf32, #tpu.memory_space<vmem>>, vector<1x64xf32>
    %11 = vector.broadcast %10 : vector<1x64xf32> to vector<256x64xf32>
    %12 = arith.addf %9, %11 : vector<256x64xf32>
    %cst_11 = arith.constant 0.000000e+00 : f32
    %13 = vector.broadcast %cst_11 : f32 to vector<256x64xf32>
    %14 = arith.maximumf %12, %13 : vector<256x64xf32>
    %c0_12 = arith.constant 0 : index
    %c0_13 = arith.constant 0 : index
    %15 = vector.load %arg6[%c0_12, %c0_13] : memref<2x64xf32, #tpu.memory_space<vmem>>, vector<1x64xf32>
    %16 = vector.broadcast %15 : vector<1x64xf32> to vector<256x64xf32>
    %17 = arith.mulf %14, %16 : vector<256x64xf32>
    %cst_14 = arith.constant dense<0.000000e+00> : vector<256xf32>
    %18 = vector.multi_reduction <add>, %17, %cst_14 [1] : vector<256x64xf32> to vector<256xf32>
    %19 = vector.shape_cast %18 : vector<256xf32> to vector<256x1xf32>
    %c1 = arith.constant 1 : index
    %c0_15 = arith.constant 0 : index
    %20 = vector.load %arg6[%c1, %c0_15] : memref<2x64xf32, #tpu.memory_space<vmem>>, vector<1x64xf32>
    %21 = vector.broadcast %20 : vector<1x64xf32> to vector<256x64xf32>
    %22 = arith.mulf %14, %21 : vector<256x64xf32>
    %cst_16 = arith.constant dense<0.000000e+00> : vector<256xf32>
    %23 = vector.multi_reduction <add>, %22, %cst_16 [1] : vector<256x64xf32> to vector<256xf32>
    %24 = vector.shape_cast %23 : vector<256xf32> to vector<256x1xf32>
    %25 = tpu.concatenate %19, %24 in 1 : vector<256x1xf32>, vector<256x1xf32> -> vector<256x2xf32>
    %c0_17 = arith.constant 0 : index
    %c0_18 = arith.constant 0 : index
    %26 = vector.load %arg7[%c0_17, %c0_18] : memref<1x2xf32, #tpu.memory_space<vmem>>, vector<1x2xf32>
    %27 = vector.broadcast %26 : vector<1x2xf32> to vector<256x2xf32>
    %28 = arith.addf %25, %27 : vector<256x2xf32>
    %c0_19 = arith.constant 0 : index
    %c0_20 = arith.constant 0 : index
    %29 = vector.load %arg8[%c0_19, %c0_20] : memref<256x2xf32, #tpu.memory_space<vmem>>, vector<256x2xf32>
    tpu.vector_store %arg8[%c0_19, %c0_20], %28 {strides = array<i32>} : memref<256x2xf32, #tpu.memory_space<vmem>>, vector<256x2xf32>,
    return
  }
  func.func @transform_0(%arg0: i32) -> (i32, i32) {
    %c0_i32 = arith.constant 0 : i32
    %c0_i32_0 = arith.constant 0 : i32
    return %arg0, %c0_i32 : i32, i32
  }
  func.func @transform_1(%arg0: i32) -> (i32, i32) {
    %c0_i32 = arith.constant 0 : i32
    %c0_i32_0 = arith.constant 0 : i32
    %c0_i32_1 = arith.constant 0 : i32
    return %c0_i32, %c0_i32_0 : i32, i32
  }
  func.func @transform_2(%arg0: i32) -> (i32, i32) {
    %c0_i32 = arith.constant 0 : i32
    %c0_i32_0 = arith.constant 0 : i32
    %c0_i32_1 = arith.constant 0 : i32
    return %c0_i32, %c0_i32_0 : i32, i32
  }
  func.func @transform_3(%arg0: i32) -> (i32, i32) {
    %c0_i32 = arith.constant 0 : i32
    %c0_i32_0 = arith.constant 0 : i32
    %c0_i32_1 = arith.constant 0 : i32
    return %c0_i32, %c0_i32_0 : i32, i32
  }
  func.func @transform_4(%arg0: i32) -> (i32, i32) {
    %c0_i32 = arith.constant 0 : i32
    %c0_i32_0 = arith.constant 0 : i32
    %c0_i32_1 = arith.constant 0 : i32
    return %c0_i32, %c0_i32_0 : i32, i32
  }
  func.func @transform_5(%arg0: i32) -> (i32, i32) {
    %c0_i32 = arith.constant 0 : i32
    %c0_i32_0 = arith.constant 0 : i32
    %c0_i32_1 = arith.constant 0 : i32
    return %c0_i32, %c0_i32_0 : i32, i32
  }
  func.func @transform_6(%arg0: i32) -> (i32, i32) {
    %c0_i32 = arith.constant 0 : i32
    %c0_i32_0 = arith.constant 0 : i32
    %c0_i32_1 = arith.constant 0 : i32
    return %c0_i32, %c0_i32_0 : i32, i32
  }
  func.func @transform_7(%arg0: i32) -> (i32, i32) {
    %c0_i32 = arith.constant 0 : i32
    %c0_i32_0 = arith.constant 0 : i32
    return %arg0, %c0_i32 : i32, i32
  }
}

</mosaic_0001>

<bundles_post_ra>
// kernel: tpu_custom_call.1
= control target key start
LH: loop header
LB: loop body
LE: loop exit
PB: predicated region body
PF: predicated region fallthrough
CT: control target
= control target key end

     0   :  { %vm70_vm0 = vcmask 523264   ;;  %vm825_vm1 = vcmask 7168   ;;  %vm894_vm2 = vcmask 15360   ;;  %s1673_s1 = inlined_call_operand.vmem [shape: f32[64,64], index: 1, kind: input, shape index: {}]   ;;  %s1674_s2 = inlined_call_operand.vmem [shape: f32[1,64], index: 2, kind: input, shape index: {}]   ;;  %s1675_s0 = inlined_call_operand.vmem [shape: f32[256,64], index: 0, kind: input, shape index: {}]   ;;  %s1676_s3 = inlined_call_operand.vmem [shape: f32[64,64], index: 3, kind: input, shape index: {}]   ;;  %s1677_s4 = inlined_call_operand.vmem [shape: f32[1,64], index: 4, kind: input, shape index: {}]   ;;  %s1678_s5 = inlined_call_operand.vmem [shape: f32[2,64], index: 5, kind: input, shape index: {}]   ;;  %s1679_s6 = inlined_call_operand.vmem [shape: f32[1,2], index: 6, kind: input, shape index: {}]   ;;  %s1680_s7 = inlined_call_operand.vmem [shape: f32[256,2], index: 7, kind: output, shape index: {}]  }
   0x1   :  { %v65_v0 = vld [vmem:[%s1673_s1 + $0x38] sm:$0xff]  ;;  %v64_v1 = vld [vmem:[%s1673_s1 + $0x30] sm:$0xff]  ;;  %v63_v2 = vld [vmem:[%s1673_s1 + $0x28] sm:$0xff] }
   0x2   :  { %175 = vmatpush.msra.mxu0 %v65_v0  ;;  %995 = vmatpush.msra.mxu2 %v65_v0  ;;  %v62_v3 = vld [vmem:[%s1673_s1 + $0x20] sm:$0xff]  ;;  %v61_v4 = vld [vmem:[%s1673_s1 + $0x18] sm:$0xff]  ;;  %v60_v5 = vld [vmem:[%s1673_s1 + $0x10] sm:$0xff] }
   0x3   :  { %v59_v6 = vld [vmem:[%s1673_s1 + $0x8] sm:$0xff]  ;;  %v58_v7 = vld [vmem:[%s1673_s1] sm:$0xff]  ;;  %v28_v12 = vld [vmem:[%s1675_s0 + $0x10] sm:$0xff] }
   0x4   :  { %176 = vmatpush.msra.mxu0 %v64_v1  ;;  %996 = vmatpush.msra.mxu2 %v64_v1  ;;  %v26_v8 = vld [vmem:[%s1675_s0] sm:$0xff]  ;;  %v27_v10 = vld [vmem:[%s1675_s0 + $0x8] sm:$0xff]  ;;  %v44_v13 = vld [vmem:[%s1675_s0 + $0x90] sm:$0xff] }
   0x5   :  { %v42_v9 = vld [vmem:[%s1675_s0 + $0x80] sm:$0xff]  ;;  %v43_v11 = vld [vmem:[%s1675_s0 + $0x88] sm:$0xff]  ;;  %v29_v14 = vld [vmem:[%s1675_s0 + $0x18] sm:$0xff] }
   0x6   :  { %177 = vmatpush.msra.mxu0 %v63_v2  ;;  %997 = vmatpush.msra.mxu2 %v63_v2  ;;  %v45_v15 = vld [vmem:[%s1675_s0 + $0x98] sm:$0xff]  ;;  %v30_v16 = vld [vmem:[%s1675_s0 + $0x20] sm:$0xff]  ;;  %v31_v18 = vld [vmem:[%s1675_s0 + $0x28] sm:$0xff] }
   0x7   :  { %v46_v17 = vld [vmem:[%s1675_s0 + $0xa0] sm:$0xff]  ;;  %v47_v19 = vld [vmem:[%s1675_s0 + $0xa8] sm:$0xff]  ;;  %v32_v20 = vld [vmem:[%s1675_s0 + $0x30] sm:$0xff] }
   0x8   :  { %178 = vmatpush.msra.mxu0 %v62_v3  ;;  %998 = vmatpush.msra.mxu2 %v62_v3  ;;  %v48_v21 = vld [vmem:[%s1675_s0 + $0xb0] sm:$0xff]  ;;  %v33_v22 = vld [vmem:[%s1675_s0 + $0x38] sm:$0xff]  ;;  %v317_v26 = vld [vmem:[%s1676_s3 + $0x28] sm:$0xff] }
   0x9   :  { %v49_v23 = vld [vmem:[%s1675_s0 + $0xb8] sm:$0xff]  ;;  %v318_v25 = vld [vmem:[%s1676_s3 + $0x30] sm:$0xff]  ;;  %v34_v27 = vld [vmem:[%s1675_s0 + $0x40] sm:$0xff] }
   0xa   :  { %179 = vmatpush.msra.mxu0 %v61_v4  ;;  %999 = vmatpush.msra.mxu2 %v61_v4  ;;  %v319_v24 = vld [vmem:[%s1676_s3 + $0x38] sm:$0xff]  ;;  %v50_v28 = vld [vmem:[%s1675_s0 + $0xc0] sm:$0xff]  ;;  %v35_v31 = vld [vmem:[%s1675_s0 + $0x48] sm:$0xff] }
   0xb   :  { %428 = vmatpush.msra.mxu1 %v319_v24  ;;  %1003 = vmatpush.msra.mxu3 %v319_v24  ;;  %v316_v29 = vld [vmem:[%s1676_s3 + $0x20] sm:$0xff]  ;;  %v315_v30 = vld [vmem:[%s1676_s3 + $0x18] sm:$0xff]  ;;  %v51_v32 = vld [vmem:[%s1675_s0 + $0xc8] sm:$0xff] }
   0xc   :  { %180 = vmatpush.msra.mxu0 %v60_v5  ;;  %1000 = vmatpush.msra.mxu2 %v60_v5  ;;  %v36_v33 = vld [vmem:[%s1675_s0 + $0x50] sm:$0xff]  ;;  %v37_v35 = vld [vmem:[%s1675_s0 + $0x58] sm:$0xff]  ;;  %v38_v38 = vld [vmem:[%s1675_s0 + $0x60] sm:$0xff] }
   0xd   :  { %429 = vmatpush.msra.mxu1 %v318_v25  ;;  %1004 = vmatpush.msra.mxu3 %v318_v25  ;;  %v52_v34 = vld [vmem:[%s1675_s0 + $0xd0] sm:$0xff]  ;;  %v53_v36 = vld [vmem:[%s1675_s0 + $0xd8] sm:$0xff]  ;;  %v313_v39 = vld [vmem:[%s1676_s3 + $0x8] sm:$0xff] }
   0xe   :  { %181 = vmatpush.msra.mxu0 %v59_v6  ;;  %1001 = vmatpush.msra.mxu2 %v59_v6  ;;  %v314_v37 = vld [vmem:[%s1676_s3 + $0x10] sm:$0xff]  ;;  %v54_v40 = vld [vmem:[%s1675_s0 + $0xe0] sm:$0xff]  ;;  %v39_v42 = vld [vmem:[%s1675_s0 + $0x68] sm:$0xff] }
   0xf   :  { %430 = vmatpush.msra.mxu1 %v317_v26  ;;  %1005 = vmatpush.msra.mxu3 %v317_v26  ;;  %v312_v41 = vld [vmem:[%s1676_s3] sm:$0xff]  ;;  %v55_v43 = vld [vmem:[%s1675_s0 + $0xe8] sm:$0xff]  ;;  %v40_v44 = vld [vmem:[%s1675_s0 + $0x70] sm:$0xff] }
  0x10   :  { %182 = vmatpush.msra.mxu0 %v58_v7  ;;  %1002 = vmatpush.msra.mxu2 %v58_v7  ;;  %v56_v45 = vld [vmem:[%s1675_s0 + $0xf0] sm:$0xff]  ;;  %v41_v46 = vld [vmem:[%s1675_s0 + $0x78] sm:$0xff]  ;;  %v1235_v48 = vld [vmem:[%s1674_s2] ss:$0 sm:$0xff] }
  0x11   :  { %931 = vmatmul.msk.f32.vlgmr.msra.gmra.mxu0 %vm70_vm0, %v26_v8  ;;  %947 = vmatmul.msk.f32.vlgmr.msra.gmra.mxu2 %vm70_vm0, %v42_v9  ;;  %v57_v47 = vld [vmem:[%s1675_s0 + $0xf8] sm:$0xff] }
  0x12   :  { %431 = vmatpush.msra.mxu1 %v316_v29  ;;  %1006 = vmatpush.msra.mxu3 %v316_v29 }
  0x14   :  { %432 = vmatpush.msra.mxu1 %v315_v30  ;;  %1007 = vmatpush.msra.mxu3 %v315_v30 }
  0x16   :  { %433 = vmatpush.msra.mxu1 %v314_v37  ;;  %1008 = vmatpush.msra.mxu3 %v314_v37 }
  0x18   :  { %434 = vmatpush.msra.mxu1 %v313_v39  ;;  %1009 = vmatpush.msra.mxu3 %v313_v39 }
  0x19   :  { %932 = vmatmul.msk.f32.gmra.mxu0 %vm70_vm0, %v27_v10  ;;  %948 = vmatmul.msk.f32.gmra.mxu2 %vm70_vm0, %v43_v11 }
  0x1a   :  { %435 = vmatpush.msra.mxu1 %v312_v41  ;;  %1010 = vmatpush.msra.mxu3 %v312_v41 }
  0x21   :  { %933 = vmatmul.msk.f32.gmra.mxu0 %vm70_vm0, %v28_v12  ;;  %949 = vmatmul.msk.f32.gmra.mxu2 %vm70_vm0, %v44_v13 }
  0x29   :  { %934 = vmatmul.msk.f32.gmra.mxu0 %vm70_vm0, %v29_v14  ;;  %950 = vmatmul.msk.f32.gmra.mxu2 %vm70_vm0, %v45_v15 }
  0x31   :  { %935 = vmatmul.msk.f32.gmra.mxu0 %vm70_vm0, %v30_v16  ;;  %951 = vmatmul.msk.f32.gmra.mxu2 %vm70_vm0, %v46_v17 }
  0x39   :  { %936 = vmatmul.msk.f32.gmra.mxu0 %vm70_vm0, %v31_v18  ;;  %952 = vmatmul.msk.f32.gmra.mxu2 %vm70_vm0, %v47_v19 }
  0x41   :  { %937 = vmatmul.msk.f32.gmra.mxu0 %vm70_vm0, %v32_v20  ;;  %953 = vmatmul.msk.f32.gmra.mxu2 %vm70_vm0, %v48_v21 }
  0x49   :  { %938 = vmatmul.msk.f32.gmra.mxu0 %vm70_vm0, %v33_v22  ;;  %954 = vmatmul.msk.f32.gmra.mxu2 %vm70_vm0, %v49_v23 }
  0x51   :  { %939 = vmatmul.msk.f32.gmra.mxu0 %vm70_vm0, %v34_v27  ;;  %955 = vmatmul.msk.f32.gmra.mxu2 %vm70_vm0, %v50_v28 }
  0x59   :  { %940 = vmatmul.msk.f32.gmra.mxu0 %vm70_vm0, %v35_v31  ;;  %956 = vmatmul.msk.f32.gmra.mxu2 %vm70_vm0, %v51_v32 }
  0x61   :  { %941 = vmatmul.msk.f32.gmra.mxu0 %vm70_vm0, %v36_v33  ;;  %957 = vmatmul.msk.f32.gmra.mxu2 %vm70_vm0, %v52_v34 }
  0x69   :  { %942 = vmatmul.msk.f32.gmra.mxu0 %vm70_vm0, %v37_v35  ;;  %958 = vmatmul.msk.f32.gmra.mxu2 %vm70_vm0, %v53_v36 }
  0x71   :  { %943 = vmatmul.msk.f32.gmra.mxu0 %vm70_vm0, %v38_v38  ;;  %959 = vmatmul.msk.f32.gmra.mxu2 %vm70_vm0, %v54_v40 }
  0x79   :  { %944 = vmatmul.msk.f32.gmra.mxu0 %vm70_vm0, %v39_v42  ;;  %960 = vmatmul.msk.f32.gmra.mxu2 %vm70_vm0, %v55_v43 }
  0x81   :  { %945 = vmatmul.msk.f32.gmra.mxu0 %vm70_vm0, %v40_v44  ;;  %961 = vmatmul.msk.f32.gmra.mxu2 %vm70_vm0, %v56_v45 }
  0x89   :  { %946 = vmatmul.msk.f32.gmra.mxu0 %vm70_vm0, %v41_v46  ;;  %962 = vmatmul.msk.f32.gmra.mxu2 %vm70_vm0, %v57_v47 }
  0x8e   :  { %v184_v49 = vpop.f32.mrf.mxu0 }
  0x8f   :  { %v185_v50 = vadd.f32 %v1235_v48, %v184_v49 }
  0x91   :  { %v280_v51 = vmax.f32 %v185_v50, 0.0 }
  0x93   :  { %963 = vmatmul.msk.f32.vlgmr.msra.gmra.mxu1 %vm70_vm0, %v280_v51 }
  0x94   :  { %v232_v52 = vpop.f32.mrf.mxu2 }
  0x95   :  { %v233_v53 = vadd.f32 %v1235_v48, %v232_v52 }
  0x96   :  { %v187_v54 = vpop.f32.mrf.mxu0 }
  0x97   :  { %v296_v55 = vmax.f32 %v233_v53, 0.0  ;;  %v188_v56 = vadd.f32 %v1235_v48, %v187_v54 }
  0x99   :  { %v281_v57 = vmax.f32 %v188_v56, 0.0  ;;  %979 = vmatmul.msk.f32.vlgmr.msra.gmra.mxu3 %vm70_vm0, %v296_v55 }
  0x9b   :  { %964 = vmatmul.msk.f32.gmra.mxu1 %vm70_vm0, %v281_v57 }
  0x9c   :  { %v235_v58 = vpop.f32.mrf.mxu2 }
  0x9d   :  { %v236_v59 = vadd.f32 %v1235_v48, %v235_v58 }
  0x9e   :  { %v190_v60 = vpop.f32.mrf.mxu0 }
  0x9f   :  { %v297_v61 = vmax.f32 %v236_v59, 0.0  ;;  %v191_v62 = vadd.f32 %v1235_v48, %v190_v60 }
  0xa1   :  { %980 = vmatmul.msk.f32.gmra.mxu3 %vm70_vm0, %v297_v61  ;;  %v282_v63 = vmax.f32 %v191_v62, 0.0 }
  0xa3   :  { %965 = vmatmul.msk.f32.gmra.mxu1 %vm70_vm0, %v282_v63 }
  0xa4   :  { %v238_v0 = vpop.f32.mrf.mxu2 }
  0xa5   :  { %v239_v1 = vadd.f32 %v1235_v48, %v238_v0 }
  0xa6   :  { %v193_v2 = vpop.f32.mrf.mxu0 }
  0xa7   :  { %v298_v3 = vmax.f32 %v239_v1, 0.0  ;;  %v194_v4 = vadd.f32 %v1235_v48, %v193_v2 }
  0xa9   :  { %v283_v5 = vmax.f32 %v194_v4, 0.0  ;;  %981 = vmatmul.msk.f32.gmra.mxu3 %vm70_vm0, %v298_v3 }
  0xab   :  { %966 = vmatmul.msk.f32.gmra.mxu1 %vm70_vm0, %v283_v5 }
  0xac   :  { %v241_v6 = vpop.f32.mrf.mxu2 }
  0xad   :  { %v242_v7 = vadd.f32 %v1235_v48, %v241_v6 }
  0xae   :  { %v196_v8 = vpop.f32.mrf.mxu0 }
  0xaf   :  { %v197_v9 = vadd.f32 %v1235_v48, %v196_v8  ;;  %v299_v10 = vmax.f32 %v242_v7, 0.0 }
  0xb1   :  { %v284_v11 = vmax.f32 %v197_v9, 0.0  ;;  %982 = vmatmul.msk.f32.gmra.mxu3 %vm70_vm0, %v299_v10 }
  0xb3   :  { %967 = vmatmul.msk.f32.gmra.mxu1 %vm70_vm0, %v284_v11 }
  0xb4   :  { %v244_v12 = vpop.f32.mrf.mxu2 }
  0xb5   :  { %v245_v13 = vadd.f32 %v1235_v48, %v244_v12 }
  0xb6   :  { %v199_v14 = vpop.f32.mrf.mxu0 }
  0xb7   :  { %v200_v15 = vadd.f32 %v1235_v48, %v199_v14  ;;  %v300_v16 = vmax.f32 %v245_v13, 0.0 }
  0xb9   :  { %v285_v17 = vmax.f32 %v200_v15, 0.0  ;;  %983 = vmatmul.msk.f32.gmra.mxu3 %vm70_vm0, %v300_v16  ;;  %v1302_v16 = vld [vmem:[%s1677_s4] ss:$0 sm:$0xff] }
  0xbb   :  { %968 = vmatmul.msk.f32.gmra.mxu1 %vm70_vm0, %v285_v17 }
  0xbc   :  { %v247_v18 = vpop.f32.mrf.mxu2 }
  0xbd   :  { %v248_v19 = vadd.f32 %v1235_v48, %v247_v18 }
  0xbe   :  { %v202_v20 = vpop.f32.mrf.mxu0 }
  0xbf   :  { %v203_v21 = vadd.f32 %v1235_v48, %v202_v20  ;;  %v301_v22 = vmax.f32 %v248_v19, 0.0 }
  0xc1   :  { %v286_v23 = vmax.f32 %v203_v21, 0.0  ;;  %984 = vmatmul.msk.f32.gmra.mxu3 %vm70_vm0, %v301_v22  ;;  %v1309_v21 = vld [vmem:[%s1678_s5] ss:$0 sm:$0xff]  ;;  %v1314_v22 = vld [vmem:[%s1678_s5 + $0x1] ss:$0 sm:$0xff] }
  0xc3   :  { %969 = vmatmul.msk.f32.gmra.mxu1 %vm70_vm0, %v286_v23 }
  0xc4   :  { %v250_v24 = vpop.f32.mrf.mxu2 }
  0xc5   :  { %v251_v25 = vadd.f32 %v1235_v48, %v250_v24 }
  0xc6   :  { %v205_v26 = vpop.f32.mrf.mxu0 }
  0xc7   :  { %v206_v27 = vadd.f32 %v1235_v48, %v205_v26  ;;  %v302_v28 = vmax.f32 %v251_v25, 0.0 }
  0xc9   :  { %v287_v29 = vmax.f32 %v206_v27, 0.0  ;;  %985 = vmatmul.msk.f32.gmra.mxu3 %vm70_vm0, %v302_v28 }
  0xcb   :  { %970 = vmatmul.msk.f32.gmra.mxu1 %vm70_vm0, %v287_v29 }
  0xcc   :  { %v253_v30 = vpop.f32.mrf.mxu2 }
  0xcd   :  { %v254_v31 = vadd.f32 %v1235_v48, %v253_v30 }
  0xce   :  { %v208_v32 = vpop.f32.mrf.mxu0 }
  0xcf   :  { %v209_v33 = vadd.f32 %v1235_v48, %v208_v32  ;;  %v303_v34 = vmax.f32 %v254_v31, 0.0 }
  0xd1   :  { %v288_v35 = vmax.f32 %v209_v33, 0.0  ;;  %986 = vmatmul.msk.f32.gmra.mxu3 %vm70_vm0, %v303_v34 }
  0xd3   :  { %971 = vmatmul.msk.f32.gmra.mxu1 %vm70_vm0, %v288_v35 }
  0xd4   :  { %v256_v36 = vpop.f32.mrf.mxu2 }
  0xd5   :  { %v257_v37 = vadd.f32 %v1235_v48, %v256_v36 }
  0xd6   :  { %v211_v38 = vpop.f32.mrf.mxu0 }
  0xd7   :  { %v212_v39 = vadd.f32 %v1235_v48, %v211_v38  ;;  %v304_v40 = vmax.f32 %v257_v37, 0.0 }
  0xd9   :  { %v289_v41 = vmax.f32 %v212_v39, 0.0  ;;  %987 = vmatmul.msk.f32.gmra.mxu3 %vm70_vm0, %v304_v40 }
  0xdb   :  { %972 = vmatmul.msk.f32.gmra.mxu1 %vm70_vm0, %v289_v41 }
  0xdc   :  { %v259_v42 = vpop.f32.mrf.mxu2 }
  0xdd   :  { %v260_v43 = vadd.f32 %v1235_v48, %v259_v42 }
  0xde   :  { %v214_v44 = vpop.f32.mrf.mxu0 }
  0xdf   :  { %v215_v45 = vadd.f32 %v1235_v48, %v214_v44  ;;  %v305_v46 = vmax.f32 %v260_v43, 0.0 }
  0xe1   :  { %v290_v47 = vmax.f32 %v215_v45, 0.0  ;;  %988 = vmatmul.msk.f32.gmra.mxu3 %vm70_vm0, %v305_v46 }
  0xe3   :  { %973 = vmatmul.msk.f32.gmra.mxu1 %vm70_vm0, %v290_v47 }
  0xe4   :  { %v262_v49 = vpop.f32.mrf.mxu2 }
  0xe5   :  { %v263_v50 = vadd.f32 %v1235_v48, %v262_v49 }
  0xe6   :  { %v217_v51 = vpop.f32.mrf.mxu0 }
  0xe7   :  { %v218_v52 = vadd.f32 %v1235_v48, %v217_v51  ;;  %v306_v53 = vmax.f32 %v263_v50, 0.0 }
  0xe9   :  { %v291_v54 = vmax.f32 %v218_v52, 0.0  ;;  %989 = vmatmul.msk.f32.gmra.mxu3 %vm70_vm0, %v306_v53 }
  0xeb   :  { %974 = vmatmul.msk.f32.gmra.mxu1 %vm70_vm0, %v291_v54 }
  0xec   :  { %v265_v55 = vpop.f32.mrf.mxu2 }
  0xed   :  { %v266_v56 = vadd.f32 %v1235_v48, %v265_v55 }
  0xee   :  { %v220_v57 = vpop.f32.mrf.mxu0 }
  0xef   :  { %v221_v58 = vadd.f32 %v1235_v48, %v220_v57  ;;  %v307_v59 = vmax.f32 %v266_v56, 0.0 }
  0xf1   :  { %v292_v60 = vmax.f32 %v221_v58, 0.0  ;;  %990 = vmatmul.msk.f32.gmra.mxu3 %vm70_vm0, %v307_v59 }
  0xf3   :  { %975 = vmatmul.msk.f32.gmra.mxu1 %vm70_vm0, %v292_v60 }
  0xf4   :  { %v268_v61 = vpop.f32.mrf.mxu2 }
  0xf5   :  { %v269_v62 = vadd.f32 %v1235_v48, %v268_v61 }
  0xf6   :  { %v223_v63 = vpop.f32.mrf.mxu0 }
  0xf7   :  { %v308_v0 = vmax.f32 %v269_v62, 0.0  ;;  %v224_v1 = vadd.f32 %v1235_v48, %v223_v63 }
  0xf9   :  { %v293_v2 = vmax.f32 %v224_v1, 0.0  ;;  %991 = vmatmul.msk.f32.gmra.mxu3 %vm70_vm0, %v308_v0 }
  0xfb   :  { %976 = vmatmul.msk.f32.gmra.mxu1 %vm70_vm0, %v293_v2 }
  0xfc   :  { %v271_v3 = vpop.f32.mrf.mxu2 }
  0xfd   :  { %v272_v4 = vadd.f32 %v1235_v48, %v271_v3 }
  0xfe   :  { %v226_v5 = vpop.f32.mrf.mxu0 }
  0xff   :  { %v309_v6 = vmax.f32 %v272_v4, 0.0  ;;  %v227_v7 = vadd.f32 %v1235_v48, %v226_v5 }
 0x101   :  { %v294_v8 = vmax.f32 %v227_v7, 0.0  ;;  %992 = vmatmul.msk.f32.gmra.mxu3 %vm70_vm0, %v309_v6 }
 0x103   :  { %977 = vmatmul.msk.f32.gmra.mxu1 %vm70_vm0, %v294_v8 }
 0x104   :  { %v274_v9 = vpop.f32.mrf.mxu2 }
 0x105   :  { %v275_v10 = vadd.f32 %v1235_v48, %v274_v9 }
 0x106   :  { %v229_v11 = vpop.f32.mrf.mxu0 }
 0x107   :  { %v310_v12 = vmax.f32 %v275_v10, 0.0  ;;  %v230_v13 = vadd.f32 %v1235_v48, %v229_v11 }
 0x109   :  { %v295_v14 = vmax.f32 %v230_v13, 0.0  ;;  %993 = vmatmul.msk.f32.gmra.mxu3 %vm70_vm0, %v310_v12 }
 0x10b   :  { %978 = vmatmul.msk.f32.gmra.mxu1 %vm70_vm0, %v295_v14 }
 0x10c   :  { %v277_v15 = vpop.f32.mrf.mxu2 }
 0x10d   :  { %v278_v17 = vadd.f32 %v1235_v48, %v277_v15 }
 0x10f   :  { %v311_v18 = vmax.f32 %v278_v17, 0.0 }
 0x110   :  { %v437_v19 = vpop.f32.mrf.mxu1 }
 0x111   :  { %v438_v20 = vadd.f32 %v1302_v16, %v437_v19  ;;  %994 = vmatmul.msk.f32.gmra.mxu3 %vm70_vm0, %v311_v18 }
 0x113   :  { %v533_v23 = vmax.f32 %v438_v20, 0.0 }
 0x115   :  { %v567_v24 = vmul.f32 %v1309_v21, %v533_v23  ;;  %v697_v48 = vmul.f32 %v1314_v22, %v533_v23 }
 0x117   :  { %v599_v25 = vsel %vm70_vm0, %v567_v24, 0.0  ;;  %v729_v26 = vsel %vm70_vm0, %v697_v48, 0.0 }
 0x118   :  { %v440_v27 = vpop.f32.mrf.mxu1  ;;  %600 = vadd.xlane.f32.xlu0 %v599_v25  ;;  %730 = vadd.xlane.f32.xlu2 %v729_v26 }
 0x119   :  { %v441_v28 = vadd.f32 %v1302_v16, %v440_v27 }
 0x11b   :  { %v534_v29 = vmax.f32 %v441_v28, 0.0 }
 0x11c   :  { %v485_v30 = vpop.f32.mrf.mxu3 }
 0x11d   :  { %v486_v31 = vadd.f32 %v1302_v16, %v485_v30  ;;  %v568_v32 = vmul.f32 %v1309_v21, %v534_v29  ;;  %v698_v40 = vmul.f32 %v1314_v22, %v534_v29 }
 0x11f   :  { %v549_v33 = vmax.f32 %v486_v31, 0.0  ;;  %v602_v34 = vsel %vm70_vm0, %v568_v32, 0.0  ;;  %v732_v45 = vsel %vm70_vm0, %v698_v40, 0.0 }
 0x120   :  { %603 = vadd.xlane.f32.xlu0 %v602_v34  ;;  %v443_v35 = vpop.f32.mrf.mxu1 }
 0x121   :  { %v583_v36 = vmul.f32 %v1309_v21, %v549_v33  ;;  %v444_v37 = vadd.f32 %v1302_v16, %v443_v35  ;;  %v713_v53 = vmul.f32 %v1314_v22, %v549_v33 }
 0x123   :  { %v647_v38 = vsel %vm70_vm0, %v583_v36, 0.0  ;;  %v535_v39 = vmax.f32 %v444_v37, 0.0  ;;  %v777_v58 = vsel %vm70_vm0, %v713_v53, 0.0 }
 0x124   :  { %v488_v41 = vpop.f32.mrf.mxu3  ;;  %648 = vadd.xlane.f32.xlu1 %v647_v38 }
 0x125   :  { %v489_v42 = vadd.f32 %v1302_v16, %v488_v41  ;;  %v569_v43 = vmul.f32 %v1309_v21, %v535_v39  ;;  %v699_v59 = vmul.f32 %v1314_v22, %v535_v39 }
 0x127   :  { %v550_v44 = vmax.f32 %v489_v42, 0.0  ;;  %v605_v49 = vsel %vm70_vm0, %v569_v43, 0.0  ;;  %v735_v0 = vsel %vm70_vm0, %v699_v59, 0.0 }
 0x128   :  { %733 = vadd.xlane.f32.xlu0 %v732_v45  ;;  %v446_v46 = vpop.f32.mrf.mxu1 }
 0x129   :  { %v447_v47 = vadd.f32 %v1302_v16, %v446_v46  ;;  %v584_v50 = vmul.f32 %v1309_v21, %v550_v44  ;;  %v714_v5 = vmul.f32 %v1314_v22, %v550_v44 }
 0x12b   :  { %v536_v51 = vmax.f32 %v447_v47, 0.0  ;;  %v650_v52 = vsel %vm70_vm0, %v584_v50, 0.0  ;;  %v780_v10 = vsel %vm70_vm0, %v714_v5, 0.0 }
 0x12c   :  { %606 = vadd.xlane.f32.xlu1 %v605_v49  ;;  %651 = vadd.xlane.f32.xlu2 %v650_v52  ;;  %v491_v54 = vpop.f32.mrf.mxu3 }
 0x12d   :  { %v492_v55 = vadd.f32 %v1302_v16, %v491_v54  ;;  %v700_v56 = vmul.f32 %v1314_v22, %v536_v51  ;;  %v570_v17 = vmul.f32 %v1309_v21, %v536_v51 }
 0x12f   :  { %v551_v57 = vmax.f32 %v492_v55, 0.0  ;;  %v738_v61 = vsel %vm70_vm0, %v700_v56, 0.0  ;;  %v608_v48 = vsel %vm70_vm0, %v570_v17, 0.0 }
 0x130   :  { %778 = vadd.xlane.f32.xlu0 %v777_v58  ;;  %v449_v60 = vpop.f32.mrf.mxu1 }
 0x131   :  { %v450_v62 = vadd.f32 %v1302_v16, %v449_v60  ;;  %v585_v63 = vmul.f32 %v1309_v21, %v551_v57  ;;  %v715_v4 = vmul.f32 %v1314_v22, %v551_v57 }
 0x133   :  { %v537_v2 = vmax.f32 %v450_v62, 0.0  ;;  %v653_v3 = vsel %vm70_vm0, %v585_v63, 0.0  ;;  %v783_v7 = vsel %vm70_vm0, %v715_v4, 0.0 }
 0x134   :  { %736 = vadd.xlane.f32.xlu1 %v735_v0  ;;  %739 = vadd.xlane.f32.xlu2 %v738_v61  ;;  %v494_v1 = vpop.f32.mrf.mxu3 }
 0x135   :  { %v495_v8 = vadd.f32 %v1302_v16, %v494_v1  ;;  %v701_v9 = vmul.f32 %v1314_v22, %v537_v2  ;;  %v571_v15 = vmul.f32 %v1309_v21, %v537_v2 }
 0x137   :  { %v552_v13 = vmax.f32 %v495_v8, 0.0  ;;  %v741_v14 = vsel %vm70_vm0, %v701_v9, 0.0  ;;  %v611_v20 = vsel %vm70_vm0, %v571_v15, 0.0 }
 0x138   :  { %654 = vadd.xlane.f32.xlu0 %v653_v3  ;;  %v452_v6 = vpop.f32.mrf.mxu1 }
 0x139   :  { %v453_v12 = vadd.f32 %v1302_v16, %v452_v6  ;;  %v716_v24 = vmul.f32 %v1314_v22, %v552_v13  ;;  %v586_v25 = vmul.f32 %v1309_v21, %v552_v13 }
 0x13b   :  { %v538_v19 = vmax.f32 %v453_v12, 0.0  ;;  %v786_v28 = vsel %vm70_vm0, %v716_v24, 0.0  ;;  %v656_v31 = vsel %vm70_vm0, %v586_v25, 0.0 }
 0x13c   :  { %781 = vadd.xlane.f32.xlu1 %v780_v10  ;;  %784 = vadd.xlane.f32.xlu2 %v783_v7  ;;  %v497_v11 = vpop.f32.mrf.mxu3 }
 0x13d   :  { %v498_v27 = vadd.f32 %v1302_v16, %v497_v11  ;;  %v572_v29 = vmul.f32 %v1309_v21, %v538_v19  ;;  %v702_v40 = vmul.f32 %v1314_v22, %v538_v19 }
 0x13f   :  { %v553_v32 = vmax.f32 %v498_v27, 0.0  ;;  %v614_v33 = vsel %vm70_vm0, %v572_v29, 0.0  ;;  %v744_v45 = vsel %vm70_vm0, %v702_v40, 0.0 }
 0x140   :  { %742 = vadd.xlane.f32.xlu0 %v741_v14  ;;  %v455_v18 = vpop.f32.mrf.mxu1 }
 0x141   :  { %v456_v23 = vadd.f32 %v1302_v16, %v455_v18  ;;  %v587_v39 = vmul.f32 %v1309_v21, %v553_v32  ;;  %v717_v50 = vmul.f32 %v1314_v22, %v553_v32 }
 0x143   :  { %v539_v26 = vmax.f32 %v456_v23, 0.0  ;;  %v659_v41 = vsel %vm70_vm0, %v587_v39, 0.0  ;;  %v789_v54 = vsel %vm70_vm0, %v717_v50, 0.0 }
 0x144   :  { %609 = vadd.xlane.f32.xlu1 %v608_v48  ;;  %612 = vadd.xlane.f32.xlu2 %v611_v20  ;;  %v500_v30 = vpop.f32.mrf.mxu3 }
 0x145   :  { %v501_v34 = vadd.f32 %v1302_v16, %v500_v30  ;;  %v573_v35 = vmul.f32 %v1309_v21, %v539_v26  ;;  %v703_v51 = vmul.f32 %v1314_v22, %v539_v26 }
 0x147   :  { %v554_v37 = vmax.f32 %v501_v34, 0.0  ;;  %v617_v38 = vsel %vm70_vm0, %v573_v35, 0.0  ;;  %v747_v55 = vsel %vm70_vm0, %v703_v51, 0.0 }
 0x148   :  { %787 = vadd.xlane.f32.xlu0 %v786_v28  ;;  %v458_v36 = vpop.f32.mrf.mxu1 }
 0x149   :  { %v459_v42 = vadd.f32 %v1302_v16, %v458_v36  ;;  %v588_v43 = vmul.f32 %v1309_v21, %v554_v37  ;;  %v718_v62 = vmul.f32 %v1314_v22, %v554_v37 }
 0x14b   :  { %v540_v47 = vmax.f32 %v459_v42, 0.0  ;;  %v662_v49 = vsel %vm70_vm0, %v588_v43, 0.0  ;;  %v792_v3 = vsel %vm70_vm0, %v718_v62, 0.0 }
 0x14c   :  { %657 = vadd.xlane.f32.xlu1 %v656_v31  ;;  %615 = vadd.xlane.f32.xlu2 %v614_v33  ;;  %v503_v44 = vpop.f32.mrf.mxu3 }
 0x14d   :  { %v504_v52 = vadd.f32 %v1302_v16, %v503_v44  ;;  %v704_v53 = vmul.f32 %v1314_v22, %v540_v47  ;;  %v574_v60 = vmul.f32 %v1309_v21, %v540_v47 }
 0x14f   :  { %v555_v58 = vmax.f32 %v504_v52, 0.0  ;;  %v750_v59 = vsel %vm70_vm0, %v704_v53, 0.0  ;;  %v620_v0 = vsel %vm70_vm0, %v574_v60, 0.0 }
 0x150   :  { %618 = vadd.xlane.f32.xlu0 %v617_v38  ;;  %v461_v46 = vpop.f32.mrf.mxu1 }
 0x151   :  { %v462_v57 = vadd.f32 %v1302_v16, %v461_v46  ;;  %v719_v2 = vmul.f32 %v1314_v22, %v555_v58  ;;  %v589_v4 = vmul.f32 %v1309_v21, %v555_v58  ;;  %v1429_v58 = vld [vmem:[%s1679_s6] ss:$0 sm:$0xff] }
 0x153   :  { %v541_v63 = vmax.f32 %v462_v57, 0.0  ;;  %v795_v7 = vsel %vm70_vm0, %v719_v2, 0.0  ;;  %v665_v10 = vsel %vm70_vm0, %v589_v4, 0.0 }
 0x154   :  { %745 = vadd.xlane.f32.xlu1 %v744_v45  ;;  %660 = vadd.xlane.f32.xlu2 %v659_v41  ;;  %v506_v56 = vpop.f32.mrf.mxu3 }
 0x155   :  { %v507_v6 = vadd.f32 %v1302_v16, %v506_v56  ;;  %v575_v8 = vmul.f32 %v1309_v21, %v541_v63  ;;  %v705_v20 = vmul.f32 %v1314_v22, %v541_v63 }
 0x157   :  { %v556_v11 = vmax.f32 %v507_v6, 0.0  ;;  %v623_v12 = vsel %vm70_vm0, %v575_v8, 0.0  ;;  %v753_v26 = vsel %vm70_vm0, %v705_v20, 0.0 }
 0x158   :  { %663 = vadd.xlane.f32.xlu0 %v662_v49  ;;  %v464_v61 = vpop.f32.mrf.mxu1 }
 0x159   :  { %v465_v1 = vadd.f32 %v1302_v16, %v464_v61  ;;  %v590_v19 = vmul.f32 %v1309_v21, %v556_v11  ;;  %v720_v30 = vmul.f32 %v1314_v22, %v556_v11 }
 0x15b   :  { %v542_v5 = vmax.f32 %v465_v1, 0.0  ;;  %v668_v24 = vsel %vm70_vm0, %v590_v19, 0.0  ;;  %v798_v35 = vsel %vm70_vm0, %v720_v30, 0.0 }
 0x15c   :  { %790 = vadd.xlane.f32.xlu1 %v789_v54  ;;  %748 = vadd.xlane.f32.xlu2 %v747_v55  ;;  %v509_v9 = vpop.f32.mrf.mxu3 }
 0x15d   :  { %v510_v13 = vadd.f32 %v1302_v16, %v509_v9  ;;  %v576_v14 = vmul.f32 %v1309_v21, %v542_v5  ;;  %v706_v31 = vmul.f32 %v1314_v22, %v542_v5 }
 0x15f   :  { %v557_v17 = vmax.f32 %v510_v13, 0.0  ;;  %v626_v18 = vsel %vm70_vm0, %v576_v14, 0.0  ;;  %v756_v36 = vsel %vm70_vm0, %v706_v31, 0.0 }
 0x160   :  { %751 = vadd.xlane.f32.xlu0 %v750_v59  ;;  %v467_v15 = vpop.f32.mrf.mxu1 }
 0x161   :  { %v468_v48 = vadd.f32 %v1302_v16, %v467_v15  ;;  %v591_v25 = vmul.f32 %v1309_v21, %v557_v17  ;;  %v721_v42 = vmul.f32 %v1314_v22, %v557_v17 }
 0x163   :  { %v543_v28 = vmax.f32 %v468_v48, 0.0  ;;  %v671_v29 = vsel %vm70_vm0, %v591_v25, 0.0  ;;  %v801_v47 = vsel %vm70_vm0, %v721_v42, 0.0 }
 0x164   :  { %621 = vadd.xlane.f32.xlu1 %v620_v0  ;;  %793 = vadd.xlane.f32.xlu2 %v792_v3  ;;  %v512_v23 = vpop.f32.mrf.mxu3 }
 0x165   :  { %v513_v32 = vadd.f32 %v1302_v16, %v512_v23  ;;  %v707_v33 = vmul.f32 %v1314_v22, %v543_v28  ;;  %v577_v40 = vmul.f32 %v1309_v21, %v543_v28 }
 0x167   :  { %v558_v38 = vmax.f32 %v513_v32, 0.0  ;;  %v759_v39 = vsel %vm70_vm0, %v707_v33, 0.0  ;;  %v629_v44 = vsel %vm70_vm0, %v577_v40, 0.0 }
 0x168   :  { %796 = vadd.xlane.f32.xlu0 %v795_v7  ;;  %v470_v27 = vpop.f32.mrf.mxu1 }
 0x169   :  { %v471_v37 = vadd.f32 %v1302_v16, %v470_v27  ;;  %v722_v46 = vmul.f32 %v1314_v22, %v558_v38  ;;  %v592_v49 = vmul.f32 %v1309_v21, %v558_v38 }
 0x16b   :  { %v544_v43 = vmax.f32 %v471_v37, 0.0  ;;  %v804_v53 = vsel %vm70_vm0, %v722_v46, 0.0  ;;  %v674_v55 = vsel %vm70_vm0, %v592_v49, 0.0 }
 0x16c   :  { %666 = vadd.xlane.f32.xlu1 %v665_v10  ;;  %624 = vadd.xlane.f32.xlu2 %v623_v12  ;;  %v515_v34 = vpop.f32.mrf.mxu3 }
 0x16d   :  { %v516_v52 = vadd.f32 %v1302_v16, %v515_v34  ;;  %v578_v54 = vmul.f32 %v1309_v21, %v544_v43  ;;  %v708_v6 = vmul.f32 %v1314_v22, %v544_v43 }
 0x16f   :  { %v559_v56 = vmax.f32 %v516_v52, 0.0  ;;  %v632_v57 = vsel %vm70_vm0, %v578_v54, 0.0  ;;  %v762_v11 = vsel %vm70_vm0, %v708_v6, 0.0 }
 0x170   :  { %627 = vadd.xlane.f32.xlu0 %v626_v18  ;;  %v473_v41 = vpop.f32.mrf.mxu1 }
 0x171   :  { %v474_v45 = vadd.f32 %v1302_v16, %v473_v41  ;;  %v593_v5 = vmul.f32 %v1309_v21, %v559_v56  ;;  %v723_v18 = vmul.f32 %v1314_v22, %v559_v56 }
 0x173   :  { %v545_v51 = vmax.f32 %v474_v45, 0.0  ;;  %v677_v7 = vsel %vm70_vm0, %v593_v5, 0.0  ;;  %v807_v48 = vsel %vm70_vm0, %v723_v18, 0.0 }
 0x174   :  { %754 = vadd.xlane.f32.xlu1 %v753_v26  ;;  %669 = vadd.xlane.f32.xlu2 %v668_v24  ;;  %v518_v50 = vpop.f32.mrf.mxu3 }
 0x175   :  { %v519_v59 = vadd.f32 %v1302_v16, %v518_v50  ;;  %v579_v60 = vmul.f32 %v1309_v21, %v545_v51  ;;  %v709_v19 = vmul.f32 %v1314_v22, %v545_v51 }
 0x177   :  { %v560_v3 = vmax.f32 %v519_v59, 0.0  ;;  %v635_v4 = vsel %vm70_vm0, %v579_v60, 0.0  ;;  %v765_v25 = vsel %vm70_vm0, %v709_v19, 0.0 }
 0x178   :  { %672 = vadd.xlane.f32.xlu0 %v671_v29  ;;  %v476_v61 = vpop.f32.mrf.mxu1 }
 0x179   :  { %v477_v8 = vadd.f32 %v1302_v16, %v476_v61  ;;  %v594_v9 = vmul.f32 %v1309_v21, %v560_v3 }
 0x17b   :  { %v546_v13 = vmax.f32 %v477_v8, 0.0  ;;  %v680_v14 = vsel %vm70_vm0, %v594_v9, 0.0 }
 0x17c   :  { %799 = vadd.xlane.f32.xlu1 %v798_v35  ;;  %757 = vadd.xlane.f32.xlu2 %v756_v36  ;;  %v521_v1 = vpop.f32.mrf.mxu3  ;;  %v724_v35 = vmul.f32 %v1314_v22, %v560_v3 }
 0x17d   :  { %v710_v20 = vmul.f32 %v1314_v22, %v546_v13  ;;  %v522_v24 = vadd.f32 %v1302_v16, %v521_v1  ;;  %v580_v30 = vmul.f32 %v1309_v21, %v546_v13 }
 0x17e   :  { %v810_v41 = vsel %vm70_vm0, %v724_v35, 0.0 }
 0x17f   :  { %v768_v29 = vsel %vm70_vm0, %v710_v20, 0.0  ;;  %v561_v32 = vmax.f32 %v522_v24, 0.0  ;;  %v638_v38 = vsel %vm70_vm0, %v580_v30, 0.0 }
 0x180   :  { %760 = vadd.xlane.f32.xlu0 %v759_v39  ;;  %v479_v12 = vpop.f32.mrf.mxu1 }
 0x181   :  { %v480_v28 = vadd.f32 %v1302_v16, %v479_v12  ;;  %v725_v42 = vmul.f32 %v1314_v22, %v561_v32  ;;  %v595_v52 = vmul.f32 %v1309_v21, %v561_v32 }
 0x183   :  { %v547_v37 = vmax.f32 %v480_v28, 0.0  ;;  %v813_v51 = vsel %vm70_vm0, %v725_v42, 0.0 }
 0x184   :  { %630 = vadd.xlane.f32.xlu1 %v629_v44  ;;  %802 = vadd.xlane.f32.xlu2 %v801_v47  ;;  %v524_v15 = vpop.f32.mrf.mxu3 }
 0x185   :  { %v581_v46 = vmul.f32 %v1309_v21, %v547_v37  ;;  %v525_v47 = vadd.f32 %v1302_v16, %v524_v15 }
 0x187   :  { %v562_v59 = vmax.f32 %v525_v47, 0.0 }
 0x188   :  { %805 = vadd.xlane.f32.xlu0 %v804_v53  ;;  %v482_v31 = vpop.f32.mrf.mxu1 }
 0x189   :  { %v483_v39 = vadd.f32 %v1302_v16, %v482_v31  ;;  %v596_v5 = vmul.f32 %v1309_v21, %v562_v59  ;;  %v726_v31 = vmul.f32 %v1314_v22, %v562_v59 }
 0x18b   :  { %v601_v62 = vpop.xlane.xlu0 %600  ;;  %v731_v63 = vpop.xlane.xlu2 %730  ;;  %v548_v45 = vmax.f32 %v483_v39, 0.0  ;;  %v686_v12 = vsel %vm70_vm0, %v596_v5, 0.0 }
 0x18c   :  { %675 = vadd.xlane.f32.xlu1 %v674_v55  ;;  %633 = vadd.xlane.f32.xlu2 %v632_v57  ;;  %v826_v0 = vsel %vm825_vm1, %v601_v62, %v731_v63  ;;  %v527_v36 = vpop.f32.mrf.mxu3  ;;  %v641_v55 = vsel %vm70_vm0, %v581_v46, 0.0  ;;  %v683_v62 = vsel %vm70_vm0, %v595_v52, 0.0 }
 0x18d   :  { %v862_v2 = vadd.f32 %v1429_v58, %v826_v0  ;;  %v582_v56 = vmul.f32 %v1309_v21, %v548_v45  ;;  %v528_v61 = vadd.f32 %v1302_v16, %v527_v36  ;;  %v712_v19 = vmul.f32 %v1314_v22, %v548_v45 }
 0x18e   :  { %v816_v36 = vsel %vm70_vm0, %v726_v31, 0.0 }
 0x18f   :  { %895 = vst.msk [vmem:[%s1680_s7] sm:$0xff] %vm894_vm2, %v862_v2  ;;  %v644_v63 = vsel %vm70_vm0, %v582_v56, 0.0  ;;  %v563_v1 = vmax.f32 %v528_v61, 0.0 }
 0x190   :  { %636 = vadd.xlane.f32.xlu0 %v635_v4  ;;  %v711_v4 = vmul.f32 %v1314_v22, %v547_v37 }
 0x191   :  { %v597_v13 = vmul.f32 %v1309_v21, %v563_v1  ;;  %v727_v32 = vmul.f32 %v1314_v22, %v563_v1 }
 0x193   :  { %v604_v10 = vpop.xlane.xlu0 %603  ;;  %v689_v18 = vsel %vm70_vm0, %v597_v13, 0.0  ;;  %v819_v37 = vsel %vm70_vm0, %v727_v32, 0.0 }
 0x194   :  { %763 = vadd.xlane.f32.xlu1 %v762_v11  ;;  %678 = vadd.xlane.f32.xlu2 %v677_v7  ;;  %v530_v57 = vpop.f32.mrf.mxu3  ;;  %v771_v11 = vsel %vm70_vm0, %v711_v4, 0.0 }
 0x195   :  { %v531_v0 = vadd.f32 %v1302_v16, %v530_v57 }
 0x197   :  { %v649_v17 = vpop.xlane.xlu1 %648 }
 0x198   :  { %681 = vadd.xlane.f32.xlu0 %v680_v14 }
 0x19b   :  { %v734_v23 = vpop.xlane.xlu0 %733 }
 0x19c   :  { %v827_v26 = vsel %vm825_vm1, %v604_v10, %v734_v23  ;;  %808 = vadd.xlane.f32.xlu1 %v807_v48  ;;  %766 = vadd.xlane.f32.xlu2 %v765_v25  ;;  %v564_v10 = vmax.f32 %v531_v0, 0.0 }
 0x19d   :  { %v863_v27 = vadd.f32 %v1429_v58, %v827_v26  ;;  %v774_v26 = vsel %vm70_vm0, %v712_v19, 0.0 }
 0x19e   :  { %v598_v14 = vmul.f32 %v1309_v21, %v564_v10 }
 0x19f   :  { %896 = vst.msk [vmem:[%s1680_s7 + $0x8] sm:$0xff] %vm894_vm2, %v863_v27  ;;  %v607_v33 = vpop.xlane.xlu1 %606  ;;  %v652_v34 = vpop.xlane.xlu2 %651  ;;  %v728_v27 = vmul.f32 %v1314_v22, %v564_v10 }
 0x1a0   :  { %769 = vadd.xlane.f32.xlu0 %v768_v29  ;;  %v692_v25 = vsel %vm70_vm0, %v598_v14, 0.0 }
 0x1a1   :  { %v822_v30 = vsel %vm70_vm0, %v728_v27, 0.0 }
 0x1a3   :  { %v779_v40 = vpop.xlane.xlu0 %778 }
 0x1a4   :  { %v842_v43 = vsel %vm825_vm1, %v649_v17, %v779_v40  ;;  %639 = vadd.xlane.f32.xlu1 %v638_v38  ;;  %811 = vadd.xlane.f32.xlu2 %v810_v41 }
 0x1a5   :  { %v878_v44 = vadd.f32 %v1429_v58, %v842_v43 }
 0x1a7   :  { %911 = vst.msk [vmem:[%s1680_s7 + $0x80] sm:$0xff] %vm894_vm2, %v878_v44  ;;  %v737_v49 = vpop.xlane.xlu1 %736  ;;  %v740_v50 = vpop.xlane.xlu2 %739 }
 0x1a8   :  { %v828_v53 = vsel %vm825_vm1, %v607_v33, %v737_v49  ;;  %814 = vadd.xlane.f32.xlu0 %v813_v51 }
 0x1a9   :  { %v864_v54 = vadd.f32 %v1429_v58, %v828_v53 }
 0x1ab   :  { %897 = vst.msk [vmem:[%s1680_s7 + $0x10] sm:$0xff] %vm894_vm2, %v864_v54  ;;  %v655_v60 = vpop.xlane.xlu0 %654 }
 0x1ac   :  { %684 = vadd.xlane.f32.xlu1 %v683_v62  ;;  %642 = vadd.xlane.f32.xlu2 %v641_v55 }
 0x1af   :  { %v782_v2 = vpop.xlane.xlu1 %781  ;;  %v785_v3 = vpop.xlane.xlu2 %784 }
 0x1b0   :  { %v843_v6 = vsel %vm825_vm1, %v652_v34, %v782_v2  ;;  %v844_v7 = vsel %vm825_vm1, %v655_v60, %v785_v3  ;;  %645 = vadd.xlane.f32.xlu0 %v644_v63 }
 0x1b1   :  { %v879_v8 = vadd.f32 %v1429_v58, %v843_v6  ;;  %v880_v9 = vadd.f32 %v1429_v58, %v844_v7 }
 0x1b3   :  { %912 = vst.msk [vmem:[%s1680_s7 + $0x88] sm:$0xff] %vm894_vm2, %v879_v8  ;;  %v743_v16 = vpop.xlane.xlu0 %742 }
 0x1b4   :  { %913 = vst.msk [vmem:[%s1680_s7 + $0x90] sm:$0xff] %vm894_vm2, %v880_v9  ;;  %772 = vadd.xlane.f32.xlu1 %v771_v11  ;;  %687 = vadd.xlane.f32.xlu2 %v686_v12 }
 0x1b7   :  { %v610_v15 = vpop.xlane.xlu1 %609  ;;  %v613_v17 = vpop.xlane.xlu2 %612 }
 0x1b8   :  { %v829_v20 = vsel %vm825_vm1, %v610_v15, %v740_v50  ;;  %v830_v23 = vsel %vm825_vm1, %v613_v17, %v743_v16  ;;  %690 = vadd.xlane.f32.xlu0 %v689_v18 }
 0x1b9   :  { %v865_v24 = vadd.f32 %v1429_v58, %v829_v20  ;;  %v866_v48 = vadd.f32 %v1429_v58, %v830_v23 }
 0x1bb   :  { %898 = vst.msk [vmem:[%s1680_s7 + $0x18] sm:$0xff] %vm894_vm2, %v865_v24  ;;  %v788_v21 = vpop.xlane.xlu0 %787 }
 0x1bc   :  { %899 = vst.msk [vmem:[%s1680_s7 + $0x20] sm:$0xff] %vm894_vm2, %v866_v48  ;;  %693 = vadd.xlane.f32.xlu1 %v692_v25  ;;  %775 = vadd.xlane.f32.xlu2 %v774_v26 }
 0x1bf   :  { %v658_v28 = vpop.xlane.xlu1 %657  ;;  %v616_v29 = vpop.xlane.xlu2 %615 }
 0x1c0   :  { %v845_v33 = vsel %vm825_vm1, %v658_v28, %v788_v21  ;;  %823 = vadd.xlane.f32.xlu0 %v822_v30 }
 0x1c1   :  { %v881_v34 = vadd.f32 %v1429_v58, %v845_v33 }
 0x1c3   :  { %914 = vst.msk [vmem:[%s1680_s7 + $0x98] sm:$0xff] %vm894_vm2, %v881_v34  ;;  %v619_v35 = vpop.xlane.xlu0 %618 }
 0x1c4   :  { %817 = vadd.xlane.f32.xlu1 %v816_v36  ;;  %820 = vadd.xlane.f32.xlu2 %v819_v37 }
 0x1c7   :  { %v746_v38 = vpop.xlane.xlu1 %745  ;;  %v661_v39 = vpop.xlane.xlu2 %660 }
 0x1c8   :  { %v831_v22 = vsel %vm825_vm1, %v616_v29, %v746_v38 }
 0x1c9   :  { %v867_v40 = vadd.f32 %v1429_v58, %v831_v22 }
 0x1cb   :  { %900 = vst.msk [vmem:[%s1680_s7 + $0x28] sm:$0xff] %vm894_vm2, %v867_v40  ;;  %v664_v41 = vpop.xlane.xlu0 %663 }
 0x1cf   :  { %v791_v42 = vpop.xlane.xlu1 %790  ;;  %v749_v43 = vpop.xlane.xlu2 %748 }
 0x1d0   :  { %v846_v44 = vsel %vm825_vm1, %v661_v39, %v791_v42  ;;  %v832_v45 = vsel %vm825_vm1, %v619_v35, %v749_v43 }
 0x1d1   :  { %v882_v46 = vadd.f32 %v1429_v58, %v846_v44  ;;  %v868_v47 = vadd.f32 %v1429_v58, %v832_v45 }
 0x1d3   :  { %915 = vst.msk [vmem:[%s1680_s7 + $0xa0] sm:$0xff] %vm894_vm2, %v882_v46  ;;  %v752_v49 = vpop.xlane.xlu0 %751 }
 0x1d4   :  { %901 = vst.msk [vmem:[%s1680_s7 + $0x30] sm:$0xff] %vm894_vm2, %v868_v47 }
 0x1d7   :  { %v622_v50 = vpop.xlane.xlu1 %621  ;;  %v794_v51 = vpop.xlane.xlu2 %793 }
 0x1d8   :  { %v833_v52 = vsel %vm825_vm1, %v622_v50, %v752_v49  ;;  %v847_v53 = vsel %vm825_vm1, %v664_v41, %v794_v51 }
 0x1d9   :  { %v869_v54 = vadd.f32 %v1429_v58, %v833_v52  ;;  %v883_v55 = vadd.f32 %v1429_v58, %v847_v53 }
 0x1db   :  { %902 = vst.msk [vmem:[%s1680_s7 + $0x38] sm:$0xff] %vm894_vm2, %v869_v54  ;;  %v797_v56 = vpop.xlane.xlu0 %796 }
 0x1dc   :  { %916 = vst.msk [vmem:[%s1680_s7 + $0xa8] sm:$0xff] %vm894_vm2, %v883_v55 }
 0x1df   :  { %v667_v57 = vpop.xlane.xlu1 %666  ;;  %v625_v59 = vpop.xlane.xlu2 %624 }
 0x1e0   :  { %v848_v60 = vsel %vm825_vm1, %v667_v57, %v797_v56 }
 0x1e1   :  { %v884_v61 = vadd.f32 %v1429_v58, %v848_v60 }
 0x1e3   :  { %917 = vst.msk [vmem:[%s1680_s7 + $0xb0] sm:$0xff] %vm894_vm2, %v884_v61  ;;  %v628_v62 = vpop.xlane.xlu0 %627 }
 0x1e7   :  { %v755_v63 = vpop.xlane.xlu1 %754  ;;  %v670_v0 = vpop.xlane.xlu2 %669 }
 0x1e8   :  { %v834_v1 = vsel %vm825_vm1, %v625_v59, %v755_v63 }
 0x1e9   :  { %v870_v2 = vadd.f32 %v1429_v58, %v834_v1 }
 0x1eb   :  { %903 = vst.msk [vmem:[%s1680_s7 + $0x40] sm:$0xff] %vm894_vm2, %v870_v2  ;;  %v673_v3 = vpop.xlane.xlu0 %672 }
 0x1ef   :  { %v800_v4 = vpop.xlane.xlu1 %799  ;;  %v758_v5 = vpop.xlane.xlu2 %757 }
 0x1f0   :  { %v849_v6 = vsel %vm825_vm1, %v670_v0, %v800_v4  ;;  %v835_v7 = vsel %vm825_vm1, %v628_v62, %v758_v5 }
 0x1f1   :  { %v885_v8 = vadd.f32 %v1429_v58, %v849_v6  ;;  %v871_v9 = vadd.f32 %v1429_v58, %v835_v7 }
 0x1f3   :  { %918 = vst.msk [vmem:[%s1680_s7 + $0xb8] sm:$0xff] %vm894_vm2, %v885_v8  ;;  %v761_v10 = vpop.xlane.xlu0 %760 }
 0x1f4   :  { %904 = vst.msk [vmem:[%s1680_s7 + $0x48] sm:$0xff] %vm894_vm2, %v871_v9 }
 0x1f7   :  { %v631_v16 = vpop.xlane.xlu1 %630  ;;  %v803_v11 = vpop.xlane.xlu2 %802 }
 0x1f8   :  { %v836_v12 = vsel %vm825_vm1, %v631_v16, %v761_v10  ;;  %v850_v13 = vsel %vm825_vm1, %v673_v3, %v803_v11 }
 0x1f9   :  { %v872_v14 = vadd.f32 %v1429_v58, %v836_v12  ;;  %v886_v15 = vadd.f32 %v1429_v58, %v850_v13 }
 0x1fb   :  { %905 = vst.msk [vmem:[%s1680_s7 + $0x50] sm:$0xff] %vm894_vm2, %v872_v14  ;;  %v806_v17 = vpop.xlane.xlu0 %805 }
 0x1fc   :  { %919 = vst.msk [vmem:[%s1680_s7 + $0xc0] sm:$0xff] %vm894_vm2, %v886_v15 }
 0x1ff   :  { %v676_v18 = vpop.xlane.xlu1 %675  ;;  %v634_v19 = vpop.xlane.xlu2 %633 }
 0x200   :  { %v851_v20 = vsel %vm825_vm1, %v676_v18, %v806_v17 }
 0x201   :  { %v887_v23 = vadd.f32 %v1429_v58, %v851_v20 }
 0x203   :  { %920 = vst.msk [vmem:[%s1680_s7 + $0xc8] sm:$0xff] %vm894_vm2, %v887_v23  ;;  %v637_v24 = vpop.xlane.xlu0 %636 }
 0x207   :  { %v764_v48 = vpop.xlane.xlu1 %763  ;;  %v679_v25 = vpop.xlane.xlu2 %678 }
 0x208   :  { %v837_v21 = vsel %vm825_vm1, %v634_v19, %v764_v48 }
 0x209   :  { %v873_v26 = vadd.f32 %v1429_v58, %v837_v21 }
 0x20b   :  { %906 = vst.msk [vmem:[%s1680_s7 + $0x58] sm:$0xff] %vm894_vm2, %v873_v26  ;;  %v682_v27 = vpop.xlane.xlu0 %681 }
 0x20f   :  { %v809_v28 = vpop.xlane.xlu1 %808  ;;  %v767_v29 = vpop.xlane.xlu2 %766 }
 0x210   :  { %v852_v30 = vsel %vm825_vm1, %v679_v25, %v809_v28  ;;  %v838_v31 = vsel %vm825_vm1, %v637_v24, %v767_v29 }
 0x211   :  { %v888_v32 = vadd.f32 %v1429_v58, %v852_v30  ;;  %v874_v33 = vadd.f32 %v1429_v58, %v838_v31 }
 0x213   :  { %921 = vst.msk [vmem:[%s1680_s7 + $0xd0] sm:$0xff] %vm894_vm2, %v888_v32  ;;  %v770_v34 = vpop.xlane.xlu0 %769 }
 0x214   :  { %907 = vst.msk [vmem:[%s1680_s7 + $0x60] sm:$0xff] %vm894_vm2, %v874_v33 }
 0x217   :  { %v640_v35 = vpop.xlane.xlu1 %639  ;;  %v812_v36 = vpop.xlane.xlu2 %811 }
 0x218   :  { %v839_v37 = vsel %vm825_vm1, %v640_v35, %v770_v34  ;;  %v853_v38 = vsel %vm825_vm1, %v682_v27, %v812_v36 }
 0x219   :  { %v875_v39 = vadd.f32 %v1429_v58, %v839_v37  ;;  %v889_v22 = vadd.f32 %v1429_v58, %v853_v38 }
 0x21b   :  { %908 = vst.msk [vmem:[%s1680_s7 + $0x68] sm:$0xff] %vm894_vm2, %v875_v39  ;;  %v815_v40 = vpop.xlane.xlu0 %814 }
 0x21c   :  { %922 = vst.msk [vmem:[%s1680_s7 + $0xd8] sm:$0xff] %vm894_vm2, %v889_v22 }
 0x21f   :  { %v685_v41 = vpop.xlane.xlu1 %684  ;;  %v643_v42 = vpop.xlane.xlu2 %642 }
 0x220   :  { %v854_v43 = vsel %vm825_vm1, %v685_v41, %v815_v40 }
 0x221   :  { %v890_v44 = vadd.f32 %v1429_v58, %v854_v43 }
 0x223   :  { %923 = vst.msk [vmem:[%s1680_s7 + $0xe0] sm:$0xff] %vm894_vm2, %v890_v44  ;;  %v646_v45 = vpop.xlane.xlu0 %645 }
 0x227   :  { %v773_v46 = vpop.xlane.xlu1 %772  ;;  %v688_v47 = vpop.xlane.xlu2 %687 }
 0x228   :  { %v840_v49 = vsel %vm825_vm1, %v643_v42, %v773_v46 }
 0x229   :  { %v876_v50 = vadd.f32 %v1429_v58, %v840_v49 }
 0x22b   :  { %909 = vst.msk [vmem:[%s1680_s7 + $0x70] sm:$0xff] %vm894_vm2, %v876_v50  ;;  %v691_v51 = vpop.xlane.xlu0 %690 }
 0x22f   :  { %v694_v52 = vpop.xlane.xlu1 %693  ;;  %v776_v53 = vpop.xlane.xlu2 %775 }
 0x230   :  { %v841_v54 = vsel %vm825_vm1, %v646_v45, %v776_v53 }
 0x231   :  { %v877_v55 = vadd.f32 %v1429_v58, %v841_v54 }
 0x233   :  { %910 = vst.msk [vmem:[%s1680_s7 + $0x78] sm:$0xff] %vm894_vm2, %v877_v55  ;;  %v824_v56 = vpop.xlane.xlu0 %823 }
 0x234   :  { %v857_v57 = vsel %vm825_vm1, %v694_v52, %v824_v56 }
 0x235   :  { %v893_v59 = vadd.f32 %v1429_v58, %v857_v57 }
 0x237   :  { %926 = vst.msk [vmem:[%s1680_s7 + $0xf8] sm:$0xff] %vm894_vm2, %v893_v59  ;;  %v818_v60 = vpop.xlane.xlu1 %817  ;;  %v821_v61 = vpop.xlane.xlu2 %820 }
 0x238   :  { %v855_v62 = vsel %vm825_vm1, %v688_v47, %v818_v60  ;;  %v856_v63 = vsel %vm825_vm1, %v691_v51, %v821_v61 }
 0x239   :  { %v891_v0 = vadd.f32 %v1429_v58, %v855_v62  ;;  %v892_v1 = vadd.f32 %v1429_v58, %v856_v63 }
 0x23b   :  { %924 = vst.msk [vmem:[%s1680_s7 + $0xe8] sm:$0xff] %vm894_vm2, %v891_v0 }
 0x23c   :  { %925 = vst.msk [vmem:[%s1680_s7 + $0xf0] sm:$0xff] %vm894_vm2, %v892_v1 }

</bundles_post_ra>
